<compile_context>
chip_gen: v7x
topology: tpu7x:2x2x1
jax: 0.10.0
libtpu: 0.0.40
codegen_flags: <defaults>
</compile_context>

<pallas_src>
import jax
import jax.numpy as jnp
from jax.experimental import pallas as pl
from jax.experimental.pallas import tpu as pltpu


def _make_fnode_kernel(K):
    """Kernel body for a node fusing K feature maps (K is a static Python int)."""

    def kernel(fusion_w_ref, *refs):
        # refs = (x_0, ..., x_{K-1}, conv_w, conv_b, o_ref)
        x_refs = refs[:K]           # each: (1, C, tile_hw)  VMEM
        conv_w_ref = refs[K]        # (Cout, C)              VMEM
        conv_b_ref = refs[K + 1]    # (Cout, 1)              VMEM
        o_ref = refs[K + 2]         # (1, Cout, tile_hw)     VMEM

        # --- combine: fast-attention weighted sum over the K maps (VPU, f32) ---
        combined = fusion_w_ref[0] * x_refs[0][0].astype(jnp.float32)
        for k in range(1, K):
            combined = combined + fusion_w_ref[k] * x_refs[k][0].astype(jnp.float32)

        # --- after_combine: SiLU in f32 (sigmoid lowers to the EUP slot) ---
        act = combined * jax.nn.sigmoid(combined)             # (C, tile_hw) f32

        # --- 1x1 conv as MXU matmul, HW on the lane dim -> lane-dense output ---
        w = conv_w_ref[...]                                    # (Cout, C), native dtype
        y = jnp.dot(w, act.astype(w.dtype),
                    preferred_element_type=jnp.float32)        # (Cout, tile_hw) f32 acc
        y = y + conv_b_ref[...]                                # (Cout, 1) broadcast
        o_ref[0] = y.astype(o_ref.dtype)

    return kernel


def _choose_tile_hw(hw, K, C, Cout, itemsize,
                    vmem_budget=24 * 1024 * 1024, max_tile=2048):
    """Largest lane tile (multiple of 128) whose double-buffered footprint fits.

    Budget is conservative so the kernel stays well under v7x's 64 MiB VMEM/TC.
    """
    per_lane = 2 * (K * C + Cout) * itemsize          # double-buffered bytes / lane elem
    cap = max(128, min(max_tile, (vmem_budget // per_lane) // 128 * 128))
    if hw <= cap:
        return hw                                     # full extent: legal, no padding
    for cand in range(cap, 127, -128):                # prefer exact divisor -> no pad pass
        if hw % cand == 0:
            return cand
    return cap                                        # fall back: pad HW up to multiple


def fnode_forward(xs, fusion_logits, conv_w, conv_b):
    """xs: list of K NCHW arrays with identical shape (N, C, H, W).

    conv_w: (Cout, C)   1x1 conv weight (PyTorch layout, BN-folded)
    conv_b: (Cout,)     1x1 conv bias (BN-folded)
    Returns NCHW array (N, Cout, H, W).
    """
    K = len(xs)
    N, C, H, W = xs[0].shape
    Cout = conv_w.shape[0]
    HW = H * W
    dtype = xs[0].dtype
    itemsize = jnp.dtype(dtype).itemsize

    # Fast-attention weight normalization (tiny glue, plain JAX).
    w_relu = jax.nn.relu(fusion_logits.astype(jnp.float32))
    w_norm = w_relu / (jnp.sum(w_relu) + 1e-4)        # (K,) f32 -> SMEM

    # NCHW kept native: flattening HW is a free reshape (no transpose / no stack).
    xs_flat = [x.reshape(N, C, HW) for x in xs]

    tile_hw = _choose_tile_hw(HW, K, C, Cout, itemsize)
    pad = (-HW) % tile_hw
    if pad:  # only taken when HW has no 128-multiple divisor <= the VMEM cap
        xs_flat = [jnp.pad(x, ((0, 0), (0, 0), (0, pad))) for x in xs_flat]
    HWp = HW + pad
    grid = (N, HWp // tile_hw)

    conv_b2 = conv_b.reshape(Cout, 1)

    x_spec = pl.BlockSpec((1, C, tile_hw), lambda n, t: (n, 0, t))

    out = pl.pallas_call(
        _make_fnode_kernel(K),
        out_shape=jax.ShapeDtypeStruct((N, Cout, HWp), dtype),
        grid_spec=pltpu.PrefetchScalarGridSpec(
            num_scalar_prefetch=0,
            grid=grid,
            in_specs=(
                # normalized fusion weights -> SMEM (scalar reads in-kernel)
                [pl.BlockSpec(memory_space=pltpu.MemorySpace.SMEM)]
                # K feature maps as separate operands, tiled over N and HW
                + [x_spec] * K
                # 1x1 conv weight / bias: full blocks, same tile every step
                + [pl.BlockSpec((Cout, C), lambda n, t: (0, 0)),
                   pl.BlockSpec((Cout, 1), lambda n, t: (0, 0))]),
            out_specs=pl.BlockSpec((1, Cout, tile_hw), lambda n, t: (n, 0, t)),
        ),
        compiler_params=pltpu.CompilerParams(
            # both axes parallel -> megacore sharding on v7x (2 TCs/chip)
            dimension_semantics=("parallel", "parallel"),
            vmem_limit_bytes=48 * 1024 * 1024,
        ),
    )(w_norm, *xs_flat, conv_w, conv_b2)

    if pad:
        out = out[:, :, :HW]                          # drop lane padding
    return out.reshape(N, Cout, H, W)                 # free reshape, still NCHW


def fnode_reference(xs, fusion_logits, conv_w, conv_b):
    """Pure-JAX reference for correctness checking."""
    w_relu = jax.nn.relu(fusion_logits.astype(jnp.float32))
    w_norm = w_relu / (jnp.sum(w_relu) + 1e-4)
    combined = sum(w_norm[k] * xs[k].astype(jnp.float32) for k in range(len(xs)))
    act = combined * jax.nn.sigmoid(combined)                     # (N, C, H, W)
    y = jnp.einsum("oc,nchw->nohw", conv_w.astype(jnp.float32), act)
    return (y + conv_b.reshape(1, -1, 1, 1)).astype(xs[0].dtype)


if __name__ == "__main__":
    key = jax.random.PRNGKey(0)
    N, C, H, W = 2, 8, 16, 16
    Cout = 8
    K = 2  # number of feature maps fed to the node

    keys = jax.random.split(key, K + 3)
    xs = [jax.random.normal(keys[k], (N, C, H, W), dtype=jnp.float32)
          for k in range(K)]
    fusion_logits = jax.random.normal(keys[K], (K,), dtype=jnp.float32)
    conv_w = (jax.random.normal(keys[K + 1], (Cout, C), dtype=jnp.float32)
              * (1.0 / jnp.sqrt(C)))
    conv_b = jax.random.normal(keys[K + 2], (Cout,), dtype=jnp.float32) * 0.1

    out = fnode_forward(xs, fusion_logits, conv_w, conv_b)
    out = jax.block_until_ready(out)

    ref = fnode_reference(xs, fusion_logits, conv_w, conv_b)
    assert out.shape == (N, Cout, H, W), out.shape
    assert jnp.allclose(out, ref, atol=1e-4, rtol=1e-4), "mismatch vs reference"

    print("KERNEL_OK")
</pallas_src>

<mosaic_0001>
module attributes {stable_mosaic.version = 11 : i64} {
  func.func @kernel(%arg0: i32, %arg1: i32, %arg2: memref<2xf32, #tpu.memory_space<smem>>, %arg3: memref<1x8x256xf32, #tpu.memory_space<vmem>>, %arg4: memref<1x8x256xf32, #tpu.memory_space<vmem>>, %arg5: memref<8x8xf32, #tpu.memory_space<vmem>>, %arg6: memref<8x1xf32, #tpu.memory_space<vmem>>, %arg7: memref<1x8x256xf32, #tpu.memory_space<vmem>>) attributes {dimension_semantics = [#tpu.dimension_semantics<parallel>, #tpu.dimension_semantics<parallel>], iteration_bounds = array<i64: 2, 1>, scalar_prefetch = 0 : i64, scratch_operands = 0 : i64, tpu.core_type = #tpu.core_type<tc>, window_params = [{transform_indices = @transform_0, window_bounds = array<i64: 2>}, {transform_indices = @transform_1, window_bounds = array<i64: 1, 8, 256>}, {transform_indices = @transform_2, window_bounds = array<i64: 1, 8, 256>}, {pipeline_mode = #tpu.pipeline_mode<synchronous>, transform_indices = @transform_3, window_bounds = array<i64: 8, 8>}, {pipeline_mode = #tpu.pipeline_mode<synchronous>, transform_indices = @transform_4, window_bounds = array<i64: 8, 1>}, {transform_indices = @transform_5, window_bounds = array<i64: 1, 8, 256>}]} {
    %c0 = arith.constant 0 : index
    %0 = memref.load %arg2[%c0] : memref<2xf32, #tpu.memory_space<smem>>
    %c0_0 = arith.constant 0 : index
    %c0_1 = arith.constant 0 : index
    %c0_2 = arith.constant 0 : index
    %1 = vector.load %arg3[%c0_0, %c0_1, %c0_2] : memref<1x8x256xf32, #tpu.memory_space<vmem>>, vector<1x8x256xf32>
    %2 = vector.shape_cast %1 : vector<1x8x256xf32> to vector<8x256xf32>
    %3 = vector.broadcast %0 : f32 to vector<8x256xf32>
    %4 = arith.mulf %3, %2 : vector<8x256xf32>
    %c1 = arith.constant 1 : index
    %5 = memref.load %arg2[%c1] : memref<2xf32, #tpu.memory_space<smem>>
    %c0_3 = arith.constant 0 : index
    %c0_4 = arith.constant 0 : index
    %c0_5 = arith.constant 0 : index
    %6 = vector.load %arg4[%c0_3, %c0_4, %c0_5] : memref<1x8x256xf32, #tpu.memory_space<vmem>>, vector<1x8x256xf32>
    %7 = vector.shape_cast %6 : vector<1x8x256xf32> to vector<8x256xf32>
    %8 = vector.broadcast %5 : f32 to vector<8x256xf32>
    %9 = arith.mulf %8, %7 : vector<8x256xf32>
    %10 = arith.addf %4, %9 : vector<8x256xf32>
    %11 = arith.negf %10 : vector<8x256xf32>
    %12 = math.exp %11 : vector<8x256xf32>
    %cst = arith.constant 1.000000e+00 : f32
    %13 = vector.broadcast %cst : f32 to vector<8x256xf32>
    %14 = arith.addf %13, %12 : vector<8x256xf32>
    %15 = arith.divf %13, %14 : vector<8x256xf32>
    %16 = arith.mulf %10, %15 : vector<8x256xf32>
    %c0_6 = arith.constant 0 : index
    %c0_7 = arith.constant 0 : index
    %17 = vector.load %arg5[%c0_6, %c0_7] : memref<8x8xf32, #tpu.memory_space<vmem>>, vector<8x8xf32>
    %cst_8 = arith.constant dense<0.000000e+00> : vector<8x256xf32>
    %18 = tpu.matmul %17, %16, %cst_8 {dimension_numbers = #tpu.dot_dimension_numbers<[1], [0], [0], [1], [0, 0, 1, 1], [], []>} : vector<8x8xf32>, vector<8x256xf32>, vector<8x256xf32> -> vector<8x256xf32>
    %c0_9 = arith.constant 0 : index
    %c0_10 = arith.constant 0 : index
    %19 = vector.load %arg6[%c0_9, %c0_10] : memref<8x1xf32, #tpu.memory_space<vmem>>, vector<8x1xf32>
    %20 = vector.broadcast %19 : vector<8x1xf32> to vector<8x256xf32>
    %21 = arith.addf %18, %20 : vector<8x256xf32>
    %c0_11 = arith.constant 0 : index
    %c0_12 = arith.constant 0 : index
    %c0_13 = arith.constant 0 : index
    %22 = vector.load %arg7[%c0_11, %c0_12, %c0_13] : memref<1x8x256xf32, #tpu.memory_space<vmem>>, vector<1x8x256xf32>
    %23 = vector.shape_cast %22 : vector<1x8x256xf32> to vector<8x256xf32>
    %24 = vector.shape_cast %21 : vector<8x256xf32> to vector<1x8x256xf32>
    tpu.vector_store %arg7[%c0_11, %c0_12, %c0_13], %24 {strides = array<i32>} : memref<1x8x256xf32, #tpu.memory_space<vmem>>, vector<1x8x256xf32>,
    return
  }
  func.func @transform_0(%arg0: i32, %arg1: i32) -> i32 {
    %c0_i32 = arith.constant 0 : i32
    %c0_i32_0 = arith.constant 0 : i32
    return %c0_i32 : i32
  }
  func.func @transform_1(%arg0: i32, %arg1: i32) -> (i32, i32, i32) {
    %c0_i32 = arith.constant 0 : i32
    %c0_i32_0 = arith.constant 0 : i32
    return %arg0, %c0_i32, %arg1 : i32, i32, i32
  }
  func.func @transform_2(%arg0: i32, %arg1: i32) -> (i32, i32, i32) {
    %c0_i32 = arith.constant 0 : i32
    %c0_i32_0 = arith.constant 0 : i32
    return %arg0, %c0_i32, %arg1 : i32, i32, i32
  }
  func.func @transform_3(%arg0: i32, %arg1: i32) -> (i32, i32) {
    %c0_i32 = arith.constant 0 : i32
    %c0_i32_0 = arith.constant 0 : i32
    %c0_i32_1 = arith.constant 0 : i32
    return %c0_i32, %c0_i32_0 : i32, i32
  }
  func.func @transform_4(%arg0: i32, %arg1: i32) -> (i32, i32) {
    %c0_i32 = arith.constant 0 : i32
    %c0_i32_0 = arith.constant 0 : i32
    %c0_i32_1 = arith.constant 0 : i32
    return %c0_i32, %c0_i32_0 : i32, i32
  }
  func.func @transform_5(%arg0: i32, %arg1: i32) -> (i32, i32, i32) {
    %c0_i32 = arith.constant 0 : i32
    %c0_i32_0 = arith.constant 0 : i32
    return %arg0, %c0_i32, %arg1 : i32, i32, i32
  }
}

</mosaic_0001>

<bundles_post_ra>
// kernel: tpu_custom_call.1
= control target key start
LH: loop header
LB: loop body
LE: loop exit
PB: predicated region body
PF: predicated region fallthrough
CT: control target
= control target key end

     0   :  { %s1137_s0 = inlined_call_operand.vmem [shape: f32[2], index: 0, kind: input, shape index: {}]   ;;  %s1138_s1 = inlined_call_operand.hbm [shape: f32[2,8,256], index: 1, kind: input, shape index: {}]   ;;  %s1139_s2 = inlined_call_operand.hbm [shape: f32[2,8,256], index: 2, kind: input, shape index: {}]   ;;  %s1140_s3 = inlined_call_operand.vmem [shape: f32[8,8], index: 3, kind: input, shape index: {}]   ;;  %s1141_s4 = inlined_call_operand.vmem [shape: f32[8,1], index: 4, kind: input, shape index: {}]   ;;  %s1142_s5 = inlined_call_operand.hbm [shape: f32[2,8,256], index: 5, kind: output, shape index: {}]  }
   0x1   :  { %1151 = sst [smem:[#allocation16_spill]] %s1137_s0 }
   0x2   :  { %1152 = sst [smem:[#allocation17_spill]] %s1138_s1 }
   0x3   :  { %10 = vsyncpa [#allocation5], 0 }
   0x4   :  { %11 = vsyncpa [#allocation3], 0 }
   0x5   :  { %13 = vsyncpa [#allocation3 + $0x1], 0 }
   0x6   :  { %14 = vsyncpa [#allocation8], 0 }
   0x7   :  { %16 = vsyncpa [#allocation8 + $0x1], 0 }
   0x8   :  { %17 = vsyncpa [#allocation4], 0 }
   0x9   :  { %19 = vsyncpa [#allocation4 + $0x1], 0  ;;  %s889_s18 = smov 0   ;;  %s891_s19 = smov 0  }
   0xa   :  { %s893_s20 = smov 0   ;;  %s895_s21 = smov 0  }
   0xb   :  { %s897_s22 = smov 0   ;;  %s899_s23 = smov 0  }
   0xc LB: > { %1153 = sst [smem:[#allocation14_spill]] %s847_s22  ;;  %s569_s24 = sadd.s32 4294967295, %s851_s23   ;;  %s851_s23 = sphi %s899_s23, %s25_s23   ;;  %s847_s22 = sphi %s897_s22, %s1173_s22   ;;  %s843_s21 = sphi %s895_s21, %s1172_s21   ;;  %s839_s20 = sphi %s893_s20, %s1176_s20   ;;  %s835_s19 = sphi %s891_s19, %s1175_s19   ;;  %s831_s18 = sphi %s889_s18, %s1174_s18  }
   0xd   : > { %s570_s25 = sadd.s32 4294967294, %s851_s23   ;;  %p80_p0 = scmp.ne.s32.totalorder %s835_s19, %s831_s18 }
   0xe   : > { %p923_p1 = scmp.eq.s32.totalorder %s569_s24, 0  ;;  %p927_p2 = scmp.eq.s32.totalorder %s569_s24, 1 }
   0xf   : > { %p182_p3 = scmp.eq.s32.totalorder %s570_s25, 1  ;;  %p571_p5 = scmp.ge.s32.totalorder %s851_s23, 1 }
  0x10   : > { %s1154_s26 = scalar_select %p923_p1, 1, 0 }
  0x11   : > { %p933_p4 = por %p923_p1, %p80_p0  ;;  %p938_p6 = por %p182_p3, %p80_p0 }
  0x12   : > { %p189_p7 = scmp.lt.s32.totalorder %s851_s23, 3  ;;  %s1158_s0 = sld [smem:[#allocation16_spill]] }
  0x13   : > { %s1156_s28 = scalar_select %p933_p4, 1, 0 }
  0x14   : > { %s1157_s29 = scalar_select %p938_p6, 1, 0 }
  0x15   : > { %p946_p8 = pnand %p571_p5, %p189_p7  ;;  %s37_s10 = sadd.s32 1, %s847_s22 }
  0x16   : > { %s67_s11 = sadd.s32 1, %s839_s20  ;;  %p39_p12 = scmp.ge.s32.totalorder %s37_s10, 2 }
  0x17   : > { %s1159_s8 = scalar_select %p946_p8, 1, 0 }
  0x18   : > { %s202_s7 = sshll.u32 %s1158_s0, 4  ;;  %p607_p10 = pneg %p946_p8  ;;  %s203_s7 = int_to_ptr.vmem [resolvable:$true] %s202_s7 }
  0x19   : > { %s686_s12 = scalar_lea.vmem %s203_s7, 16  ;;  %p694_p7 = scmp.lt.s32.totalorder %s203_s7, %s203_s7 }
  0x1a   : > { %p955_p11 = pnand %p607_p10, %p923_p1  ;;  %p687_p13 = scmp.ne.s32.totalorder %s203_s7, %s686_s12 }
  0x1b   : > { %p695_p6 = scmp.lt.s32.totalorder %s686_s12, %s686_s12 }
  0x1c   : > { %p688_p0 = pneg %p955_p11 }
  0x1d   : > { %p696_p9 = por %p695_p6, %p694_p7 }
  0x1e   : > { %p689_p3 = pnand %p688_p0, %p687_p13 }
  0x20   : > { %p690_p5 = pneg %p689_p3 }
  0x22   : > { %p697_p4 = pnand %p696_p9, %p690_p5 }
  0x24   : > { %700 = shalt.err (!%p697_p4)
}
  0x25   : > { %s853_s13 = smov [#allocation2]   ;;  %s1178_s10 = smov (%p39_p12, %s37_s10), 0 }
  0x26   : > { %610 = dma.vmem_to_smem (!%p955_p11), %s203_s7, 16, %s853_s13, [#allocation5]  }
  0x27   : > { %1161 = sst [smem:[#allocation15_spill]] %s1178_s10  ;;  %p74_p10 = scmp.ne.s32.totalorder %s839_s20, %s835_s19 }
  0x28   : > { %p75_p6 = scmp.eq.s32.totalorder %s851_s23, 0  ;;  %s62_s14 = ssub.s32 %s847_s22, %s1178_s10 }
  0x29   : > { %p623_p4 = scmp.lt.s32.totalorder %s851_s23, 2  ;;  %p65_p9 = scmp.eq.s32.totalorder %s62_s14, 0 }
  0x2a   : > { %p76_p13 = por %p75_p6, %p74_p10  ;;  %p975_p0 = por %p927_p2, %p74_p10 }
  0x2b   : > { %s980_s16 = sand.u32 1, %s839_s20   ;;  %s594_s25 = sshll.u32 %s847_s22, 8 }
  0x2c   : > { %s1162_s15 = scalar_select %p975_p0, 1, 0 }
  0x2d   : > { %s983_s17 = scalar_select %p65_p9, %s839_s20, %s67_s11  }
  0x2e   : > { %s1144_s24 = sshll.u32 %s980_s16, 4  ;;  %s1163_s1 = sld [smem:[#allocation17_spill]] }
  0x2f   : > { %s223_s27 = scalar_lea.vmem [#allocation6], %s1144_s24  ;;  %p996_p2 = pnand %p623_p4, %p76_p13 }
  0x30   : > { %s233_s9 = sshll.u32 %s223_s27, 4  ;;  %s1003_s14 = scalar_lea.hbm %s1139_s2, %s594_s25  ;;  %s994_s9 = int_to_ptr.vmem [resolvable:$true] %s233_s9 }
  0x31   : > { %s220_s30 = scalar_lea.sflag [#allocation3], %s980_s16  ;;  %p703_p12 = pneg %p996_p2 }
  0x34   : > { %s990_s7 = scalar_lea.hbm %s1163_s1, %s594_s25  ;;  %s706_s0 = scalar_lea.hbm %s1163_s1, 512 }
  0x35   : > { %s701_s6 = scalar_lea.hbm %s990_s7, 256  ;;  %p707_p7 = scmp.lt.u32.totalorder %s990_s7, %s1163_s1 }
  0x36   : > { %p702_p11 = scmp.ne.s32.totalorder %s990_s7, %s701_s6  ;;  %p708_p10 = scmp.lt.u32.totalorder %s706_s0, %s701_s6 }
  0x37   : > { %p710_p4 = scmp.lt.u32.totalorder %s701_s6, %s990_s7 }
  0x38   : > { %p704_p3 = pnand %p703_p12, %p702_p11  ;;  %p709_p6 = por %p708_p10, %p707_p7 }
  0x3a   : > { %p705_p5 = pneg %p704_p3  ;;  %p711_p9 = por %p710_p4, %p709_p6 }
  0x3c   : > { %p712_p13 = pnand %p711_p9, %p705_p5 }
  0x3e   : > { %715 = shalt.err (!%p712_p13)
}
  0x3f   : > { %s716_s25 = scalar_lea.vmem %s994_s9, 256  ;;  %s854_s24 = smov [#allocation6]  }
  0x40   : > { %p717_p11 = scmp.ne.s32.totalorder %s994_s9, %s716_s25  ;;  %s721_s11 = sshll.u32 %s854_s24, 4  ;;  %s722_s11 = int_to_ptr.vmem [resolvable:$false] %s721_s11 }
  0x41   : > { %s723_s22 = scalar_lea.vmem %s722_s11, 512  ;;  %p724_p1 = scmp.lt.s32.totalorder %s994_s9, %s722_s11 }
  0x42   : > { %p719_p3 = pnand %p717_p11, %p703_p12  ;;  %p725_p7 = scmp.lt.s32.totalorder %s723_s22, %s716_s25 }
  0x44   : > { %p720_p0 = pneg %p719_p3  ;;  %p726_p10 = por %p725_p7, %p724_p1 }
  0x46   : > { %p727_p6 = pnand %p726_p10, %p720_p0 }
  0x48   : > { %730 = shalt.err (!%p727_p6)
}
  0x49   : > { %614 = dma.hbm_to_vmem [thread:$0]  (!%p996_p2), %s990_s7, 256, %s994_s9, %s220_s30  }
  0x4a   : > { %s1165_s0 = sshll.u32 %s980_s16, 4  ;;  %s241_s6 = scalar_lea.sflag [#allocation8], %s980_s16 }
  0x4b   : > { %s244_s10 = scalar_lea.vmem [#allocation7], %s1165_s0  ;;  %s731_s27 = scalar_lea.hbm %s1003_s14, 256 }
  0x4c   : > { %s254_s13 = sshll.u32 %s244_s10, 4  ;;  %p732_p1 = scmp.ne.s32.totalorder %s1003_s14, %s731_s27  ;;  %s255_s13 = int_to_ptr.vmem [resolvable:$true] %s254_s13 }
  0x4d   : > { %s736_s11 = scalar_lea.hbm %s1139_s2, 512  ;;  %p737_p4 = scmp.lt.u32.totalorder %s1003_s14, %s1139_s2 }
  0x4e   : > { %p734_p0 = pnand %p732_p1, %p703_p12  ;;  %p738_p9 = scmp.lt.u32.totalorder %s736_s11, %s731_s27 }
  0x4f   : > { %p740_p11 = scmp.lt.u32.totalorder %s731_s27, %s1003_s14 }
  0x50   : > { %p735_p5 = pneg %p734_p0  ;;  %p739_p13 = por %p738_p9, %p737_p4 }
  0x52   : > { %p741_p3 = por %p740_p11, %p739_p13 }
  0x54   : > { %p742_p7 = pnand %p741_p3, %p735_p5 }
  0x56   : > { %745 = shalt.err (!%p742_p7)
}
  0x57   : > { %s746_s16 = scalar_lea.vmem %s255_s13, 256  ;;  %s855_s7 = smov [#allocation7]  }
  0x58   : > { %p747_p10 = scmp.ne.s32.totalorder %s255_s13, %s746_s16  ;;  %s751_s9 = sshll.u32 %s855_s7, 4  ;;  %s752_s9 = int_to_ptr.vmem [resolvable:$false] %s751_s9 }
  0x59   : > { %s753_s30 = scalar_lea.vmem %s752_s9, 512  ;;  %p754_p0 = scmp.lt.s32.totalorder %s255_s13, %s752_s9 }
  0x5a   : > { %p749_p6 = pnand %p747_p10, %p703_p12  ;;  %p755_p8 = scmp.lt.s32.totalorder %s753_s30, %s746_s16 }
  0x5c   : > { %p750_p1 = pneg %p749_p6  ;;  %p756_p4 = por %p755_p8, %p754_p0 }
  0x5e   : > { %p757_p9 = pnand %p756_p4, %p750_p1 }
  0x60   : > { %760 = shalt.err (!%p757_p9)
}
  0x61   : > { %617 = dma.hbm_to_vmem [thread:$0]  (!%p996_p2), %s1003_s14, 256, %s255_s13, %s241_s6  }
  0x62   : > { %p1166_p5 = scmp.ne.s32.totalorder %s1159_s8, 0 }
  0x63   : > { %p1167_p13 = scmp.ne.s32.totalorder (!%p1166_p5), %s1154_s26, 0 }
  0x64   : > { %263 = sbr.rel (%p1166_p5) target bundleno = 386 (0x182), region = 40 }
  0x6b   : > { %814 = dma.done.wait (%p1167_p13), [#allocation5], 16  }
  0x6c   : > { %816 = vsyncadd (%p1167_p13), [#allocation5], 4294967280  ;;  %s1060_s1 = sand.u32 1, %s835_s19   ;;  %p1168_p8 = scmp.ne.s32.totalorder %s1156_s28, 0 }
  0x6d   : > { %s1063_s0 = sshll.u32 %s1060_s1, 4  ;;  %s270_s12 = scalar_lea.sflag [#allocation3], %s1060_s1 }
  0x6e   : > { %s273_s14 = scalar_lea.vmem [#allocation6], %s1063_s0 }
  0x6f   : > { %818 = dma.done.wait (%p1168_p8), %s270_s12, 256  }
  0x70   : > { %820 = vsyncadd (%p1168_p8), %s270_s12, 4294967040  ;;  %s279_s26 = scalar_lea.sflag [#allocation8], %s1060_s1  ;;  %s282_s8 = scalar_lea.vmem [#allocation7], %s1063_s0 }
  0x71   : > { %822 = dma.done.wait (%p1168_p8), %s279_s26, 256  }
  0x72   : > { %824 = vsyncadd (%p1168_p8), %s279_s26, 4294967040 }
  0x73   : > { %287 = sfence }
  0x74   : > { %s318_s10 = sld [smem:[#allocation2]]  ;;  %s585_s13 = sld [smem:[#allocation2 + $0x1]]  ;;  %v856_v0 = vmov 0.0   ;;  %v857_v1 = vmov 0   ;;  %v347_v2 = vld [vmem:[%s1141_s4] sm:$0xff]  ;;  %v320_v3 = vld [vmem:[%s273_s14 + $0x8] sm:$0xff] }
  0x75   : > { %421 = vmatprep.mubr.f32.mxu0 %v856_v0  ;;  %677 = vset.pattern.permute.xlu0 %v857_v1  ;;  %v326_v4 = vld [vmem:[%s282_s8 + $0x8] sm:$0xff]  ;;  %v319_v5 = vld [vmem:[%s273_s14] sm:$0xff]  ;;  %vm353_vm0 = vcmask 64512   ;;  %s596_s24 = sshll.u32 %s843_s21, 8  ;;  %s314_s11 = scalar_lea.vmem [#allocation9], %s1063_s0 }
  0x76   : > { %350 = vperm.xlu0 %677, %v347_v2   ;;  %v325_v6 = vld [vmem:[%s282_s8] sm:$0xff]  ;;  %s447_s22 = sshll.u32 %s314_s11, 4  ;;  %s1088_s9 = scalar_lea.hbm %s1142_s5, %s596_s24  ;;  %s1090_s22 = int_to_ptr.vmem [resolvable:$true] %s447_s22 }
  0x77   : > { %v346_v25 = vld [vmem:[%s1140_s3] sm:$0xff]  ;;  %s431_s30 = scalar_lea.sflag [#allocation4], %s1060_s1  ;;  %s761_s21 = scalar_lea.vmem %s1090_s22, 256 }
  0x78   : > { %p762_p2 = scmp.ne.s32.totalorder %s1090_s22, %s761_s21  ;;  %p1169_p12 = scmp.ne.s32.totalorder %s1162_s15, 0 }
  0x79   : > { %s858_s0 = smov [#allocation9]  }
  0x7a   : > { %v321_v7 = vstv %s318_s10  ;;  %v327_v8 = vstv %s585_s13  ;;  %p763_p11 = pnand %p762_p2, %p1169_p12  ;;  %s765_s12 = sshll.u32 %s858_s0, 4  ;;  %s766_s12 = int_to_ptr.vmem [resolvable:$false] %s765_s12 }
  0x7b   : > { %v323_v9 = vmul.f32 %v321_v7, %v320_v3  ;;  %v329_v10 = vmul.f32 %v327_v8, %v326_v4  ;;  %v322_v11 = vmul.f32 %v321_v7, %v319_v5  ;;  %v328_v12 = vmul.f32 %v327_v8, %v325_v6  ;;  %s767_s14 = scalar_lea.vmem %s766_s12, 512  ;;  %p768_p7 = scmp.lt.s32.totalorder %s1090_s22, %s766_s12 }
  0x7c   : > { %p764_p3 = pneg %p763_p11  ;;  %p769_p10 = scmp.lt.s32.totalorder %s767_s14, %s761_s21 }
  0x7d   : > { %v331_v13 = vadd.f32 %v329_v10, %v323_v9  ;;  %v330_v14 = vadd.f32 %v328_v12, %v322_v11 }
  0x7e   : > { %p770_p6 = por %p769_p10, %p768_p7 }
  0x7f   : > { %v587_v15 = vmul.f32 -1.442695, %v331_v13  ;;  %v586_v16 = vmul.f32 -1.442695, %v330_v14 }
  0x80   : > { %p771_p1 = pnand %p770_p6, %p764_p3 }
  0x81   : > { %678 = vpow2.f32 %v587_v15 }
  0x82   : > { %680 = vpow2.f32 %v586_v16 }
  0x8b   : > { %v679_v17 = vpop.eup %678 }
  0x8c   : > { %v681_v18 = vpop.eup %680  ;;  %v339_v19 = vadd.f32 1.0, %v679_v17 }
  0x8d   : > { %v338_v20 = vadd.f32 1.0, %v681_v18 }
  0x8e   : > { %682 = vrcp.f32 %v339_v19 }
  0x8f   : > { %684 = vrcp.f32 %v338_v20 }
  0x98   : > { %v683_v21 = vpop.eup %682 }
  0x99   : > { %v685_v22 = vpop.eup %684  ;;  %v345_v23 = vmul.f32 %v683_v21, %v331_v13 }
  0x9a   : > { %v344_v24 = vmul.f32 %v685_v22, %v330_v14 }
  0x9b   : > { %357 = vmatprep.subr.mxu0 %v345_v23 }
  0x9c   : > { %358 = vmatpush1.msra.mxu0 %v344_v24 }
  0x9d   : > { %588 = vmatmul.mubr.msk.f32.vlgmr.msra.gmra.mrb[0].mxu0 %vm353_vm0, %v346_v25 }
  0xf5   : > { %v351_v26 = vpop.permute.xlu0 %350 }
 0x170   : > { %v423_v27 = vpop.f32.mrb[0].mxu0 }
 0x171   : > { %v424_v28 = vadd.f32 %v423_v27, %v351_v26  ;;  %v425_v29 = vpop.f32.mrb[1].mxu0 }
 0x172   : > { %v426_v30 = vadd.f32 %v425_v29, %v351_v26 }
 0x173   : > { %428 = vst [vmem:[%s314_s11] sm:$0xff] %v424_v28 }
 0x174   : > { %429 = vst [vmem:[%s314_s11 + $0x8] sm:$0xff] %v426_v30 }
 0x175   : > { %774 = shalt.err (!%p771_p1)
}
 0x176   : > { %s775_s1 = scalar_lea.hbm %s1088_s9, 256  ;;  %s779_s10 = scalar_lea.hbm %s1142_s5, 512 }
 0x177   : > { %p776_p0 = scmp.ne.s32.totalorder %s1088_s9, %s775_s1  ;;  %p780_p5 = scmp.lt.u32.totalorder %s1088_s9, %s1142_s5 }
 0x178   : > { %p781_p13 = scmp.lt.u32.totalorder %s779_s10, %s775_s1  ;;  %p783_p2 = scmp.lt.u32.totalorder %s775_s1, %s1088_s9 }
 0x179   : > { %p777_p4 = pnand %p776_p0, %p1169_p12 }
 0x17a   : > { %p782_p8 = por %p781_p13, %p780_p5 }
 0x17b   : > { %p778_p9 = pneg %p777_p4 }
 0x17c   : > { %p784_p11 = por %p783_p2, %p782_p8 }
 0x17e   : > { %p785_p3 = pnand %p784_p11, %p778_p9 }
 0x180   : > { %788 = shalt.err (!%p785_p3)
}
 0x181   : > { %605 = dma.vmem_to_hbm [thread:$0]  (%p1169_p12), %s1090_s22, 256, %s1088_s9, %s431_s30  }
 0x182 PF: > { %s459_s27 = sand.u32 1, %s831_s18   ;;  %p1170_p7 = scmp.ne.s32.totalorder %s1157_s29, 0 }
 0x183   : > { %p1171_p10 = scmp.ge.s32.totalorder %s851_s23, 2  ;;  %s460_s28 = scalar_lea.sflag [#allocation4], %s459_s27 }
 0x185   : > { %p619_p6 = pnand %p1171_p10, %p1170_p7 }
 0x187   : > { %826 = dma.done.wait (!%p619_p6), %s460_s28, 256  }
 0x188   : > { %828 = vsyncadd (!%p619_p6), %s460_s28, 4294967040  ;;  %s25_s23 = sadd.s32 1, %s851_s23   ;;  %s1172_s21 = sld [smem:[#allocation14_spill]] }
 0x189   : > { %p22_p1 = scmp.ge.s32.totalorder %s25_s23, 4   ;;  %s1173_s22 = sld [smem:[#allocation15_spill]] }
 0x18a   : > { %s1174_s18 = smov %s835_s19  ;;  %s1175_s19 = smov %s839_s20 }
 0x18b   : > { %s1176_s20 = smov %s983_s17  ;;  %24 = sbr.rel (!%p22_p1) target bundleno = 12 (0xc), region = 103 }
 0x192   :  { %465 = vsyncpa [#allocation3], 1 }
 0x193   :  { %467 = vsyncpa [#allocation3 + $0x1], 1 }
 0x194   :  { %468 = vsyncpa [#allocation8], 1 }
 0x195   :  { %470 = vsyncpa [#allocation8 + $0x1], 1 }
 0x196   :  { %471 = vsyncpa [#allocation4], 1 }
 0x197   :  { %473 = vsyncpa [#allocation4 + $0x1], 1 }
 0x198   :  { %474 = vsyncpa [#allocation5], 1 }
 0x199   :  { %476 = vsyncpa [#allocation5 + $0x1], 1 }

</bundles_post_ra>
